<compile_context>
chip_gen: v6e
topology: v6e:2x2x1
jax: 0.10.0
libtpu: 0.0.40
codegen_flags: <defaults>
</compile_context>

<pallas_src>
import functools

import jax
import jax.numpy as jnp
from jax.experimental import pallas as pl
from jax.experimental.pallas import tpu as pltpu


def _conv_bn_lrelu_kernel(x_ref, w_ref, gamma_ref, beta_ref, mask_ref, o_ref, *,
                          W, Ho, Wo, k, eps, slope, inv_count):
    """Fused Conv(kxk, valid) + train-mode BatchNorm + LeakyReLU for the whole batch.

    x_ref:     (N, Cin, H*W + k-1)  bf16  flat NCHW images, right-padded (tap slices in-bounds)
    w_ref:     (Cout, k*k*Cin)      bf16  im2col-ordered weights (tap-major, channel-minor)
    gamma_ref: (Cout, 1)            f32
    beta_ref:  (Cout, 1)            f32
    mask_ref:  (1, Ho*W)            f32   1.0 on valid columns (col % W < Wo), 0.0 on wrap columns
    o_ref:     (N, Cout, Ho*W)      f32   wide output; wrap columns dropped in the wrapper
    """
    N = x_ref.shape[0]
    Lw = Ho * W

    x = x_ref[...]
    w = w_ref[...]
    mask = mask_ref[...]
    cout = w.shape[0]

    # ---- conv as one shifted-im2col MXU matmul per image + per-channel batch statistics ----
    ys = []
    ch_sum = jnp.zeros((cout, 1), dtype=jnp.float32)
    ch_ssq = jnp.zeros((cout, 1), dtype=jnp.float32)
    for n in range(N):                                   # N is small & static
        xn = x[n]                                        # (Cin, H*W + k-1) bf16
        xcat = jnp.concatenate(
            [xn[:, ki * W + kj: ki * W + kj + Lw]        # constant lane shift per tap
             for ki in range(k) for kj in range(k)],
            axis=0)                                      # (k*k*Cin, Ho*W) bf16
        y = jnp.dot(w, xcat, preferred_element_type=jnp.float32)   # (Cout, Ho*W) f32
        ys.append(y)
        yv = y * mask                                    # zero the W-Wo wrap columns
        ch_sum = ch_sum + jnp.sum(yv, axis=1, keepdims=True)
        ch_ssq = ch_ssq + jnp.sum(yv * y, axis=1, keepdims=True)

    # ---- fold train-mode BN into a single per-channel scale/shift (all f32, tiny) ----
    mean = ch_sum * inv_count
    var = jnp.maximum(ch_ssq * inv_count - mean * mean, 0.0)       # biased variance (train mode)
    scale = gamma_ref[...] * jax.lax.rsqrt(var + eps)              # (Cout, 1)
    shift = beta_ref[...] - mean * scale                           # (Cout, 1)

    # ---- normalize + LeakyReLU, lane-dense slab stores ----
    for n in range(N):
        z = ys[n] * scale + shift
        z = jnp.maximum(z, slope * z)                    # LeakyReLU as mul+max
        o_ref[n] = z.astype(o_ref.dtype)


def conv_block_forward(x, conv_w, conv_b, bn_gamma, bn_beta, *, ksize=3,
                       eps=1e-5, negative_slope=0.01):
    # conv bias is mathematically cancelled by train-mode BN mean subtraction -> not used.
    del conv_b
    N, Cin, H, W = x.shape
    Cout = conv_w.shape[0]
    Ho, Wo = H - ksize + 1, W - ksize + 1
    HWp = H * W + (ksize - 1)

    # Flat NCHW view, right-padded so every lane-shifted tap slice is in-bounds; bf16 halves bytes.
    x_flat = jnp.pad(x.reshape(N, Cin, H * W), ((0, 0), (0, 0), (0, ksize - 1)))
    x_flat = x_flat.astype(jnp.bfloat16)
    # (Cout, Cin, kh, kw) -> (Cout, kh*kw*Cin); column order (ki*k+kj)*Cin+ci matches the kernel's
    # tap concatenation order.
    w_mat = jnp.transpose(conv_w, (0, 2, 3, 1)).reshape(Cout, ksize * ksize * Cin)
    w_mat = w_mat.astype(jnp.bfloat16)

    gamma = bn_gamma.reshape(Cout, 1).astype(jnp.float32)
    beta = bn_beta.reshape(Cout, 1).astype(jnp.float32)
    # Hoisted valid-column mask: column c of the wide output is valid iff (c % W) < Wo.
    col = jnp.arange(Ho * W, dtype=jnp.int32) % W
    mask = (col < Wo).astype(jnp.float32).reshape(1, Ho * W)

    kern = functools.partial(
        _conv_bn_lrelu_kernel, W=W, Ho=Ho, Wo=Wo, k=ksize, eps=eps,
        slope=negative_slope, inv_count=1.0 / float(N * Ho * Wo))

    out_wide = pl.pallas_call(
        kern,
        grid=(1,),
        in_specs=[
            pl.BlockSpec((N, Cin, HWp), lambda i: (0, 0, 0)),
            pl.BlockSpec((Cout, ksize * ksize * Cin), lambda i: (0, 0)),
            pl.BlockSpec((Cout, 1), lambda i: (0, 0)),
            pl.BlockSpec((Cout, 1), lambda i: (0, 0)),
            pl.BlockSpec((1, Ho * W), lambda i: (0, 0)),
        ],
        out_specs=pl.BlockSpec((N, Cout, Ho * W), lambda i: (0, 0, 0)),
        out_shape=jax.ShapeDtypeStruct((N, Cout, Ho * W), jnp.float32),
        compiler_params=pltpu.CompilerParams(
            dimension_semantics=("arbitrary",),
            vmem_limit_bytes=64 * 1024 * 1024),
    )(x_flat, w_mat, gamma, beta, mask)

    # Drop the W-Wo wrap columns (cheap wrapper-side layout plumbing) -> NCHW output.
    return out_wide.reshape(N, Cout, Ho, W)[:, :, :, :Wo]


def reference_forward(x, conv_w, conv_b, bn_gamma, bn_beta):
    """Plain-JAX reference matching PyTorch ConvBlock.forward in train mode.

    Uses the same bf16-rounded conv operands (f32 accumulation) as the kernel so the comparison
    only measures accumulation-order differences. Bias is kept here on purpose to show that
    dropping it in the kernel is exact under train-mode BN.
    """
    y = jax.lax.conv_general_dilated(
        x.astype(jnp.bfloat16), conv_w.astype(jnp.bfloat16),
        window_strides=(1, 1), padding="VALID",
        dimension_numbers=("NCHW", "OIHW", "NCHW"),
        preferred_element_type=jnp.float32,
    ) + conv_b.reshape(1, -1, 1, 1)
    mean = jnp.mean(y, axis=(0, 2, 3), keepdims=True)
    var = jnp.mean((y - mean) ** 2, axis=(0, 2, 3), keepdims=True)
    z = (y - mean) * jax.lax.rsqrt(var + 1e-5)
    z = z * bn_gamma.reshape(1, -1, 1, 1) + bn_beta.reshape(1, -1, 1, 1)
    return jnp.where(z >= 0, z, 0.01 * z)


if __name__ == "__main__":
    key = jax.random.PRNGKey(0)
    k_x, k_w, k_b, k_g, k_beta = jax.random.split(key, 5)

    N, Cin, H, W = 2, 4, 16, 16
    Cout, ksize = 8, 3

    x = jax.random.normal(k_x, (N, Cin, H, W), dtype=jnp.float32)
    conv_w = 0.1 * jax.random.normal(k_w, (Cout, Cin, ksize, ksize), dtype=jnp.float32)
    conv_b = 0.1 * jax.random.normal(k_b, (Cout,), dtype=jnp.float32)
    # Non-trivial affine params to exercise the folded scale/shift path.
    bn_gamma = 1.0 + 0.1 * jax.random.normal(k_g, (Cout,), dtype=jnp.float32)
    bn_beta = 0.1 * jax.random.normal(k_beta, (Cout,), dtype=jnp.float32)

    fwd = jax.jit(functools.partial(conv_block_forward, ksize=ksize))
    out = jax.block_until_ready(fwd(x, conv_w, conv_b, bn_gamma, bn_beta))

    ref = jax.block_until_ready(reference_forward(x, conv_w, conv_b, bn_gamma, bn_beta))
    assert out.shape == (N, Cout, H - ksize + 1, W - ksize + 1)
    err = float(jnp.max(jnp.abs(out - ref)))
    assert err < 5e-3, f"max abs error {err}"

    print("KERNEL_OK")
</pallas_src>

<mosaic_0001>
module attributes {stable_mosaic.version = 11 : i64} {
  func.func @_conv_bn_lrelu_kernel(%arg0: i32, %arg1: memref<2x4x258xbf16, #tpu.memory_space<vmem>>, %arg2: memref<8x36xbf16, #tpu.memory_space<vmem>>, %arg3: memref<8x1xf32, #tpu.memory_space<vmem>>, %arg4: memref<8x1xf32, #tpu.memory_space<vmem>>, %arg5: memref<1x224xf32, #tpu.memory_space<vmem>>, %arg6: memref<2x8x224xf32, #tpu.memory_space<vmem>>) attributes {dimension_semantics = [#tpu.dimension_semantics<arbitrary>], iteration_bounds = array<i64: 1>, scalar_prefetch = 0 : i64, scratch_operands = 0 : i64, tpu.core_type = #tpu.core_type<tc>, window_params = [{pipeline_mode = #tpu.pipeline_mode<synchronous>, transform_indices = @transform_0, window_bounds = array<i64: 2, 4, 258>}, {pipeline_mode = #tpu.pipeline_mode<synchronous>, transform_indices = @transform_1, window_bounds = array<i64: 8, 36>}, {pipeline_mode = #tpu.pipeline_mode<synchronous>, transform_indices = @transform_2, window_bounds = array<i64: 8, 1>}, {pipeline_mode = #tpu.pipeline_mode<synchronous>, transform_indices = @transform_3, window_bounds = array<i64: 8, 1>}, {pipeline_mode = #tpu.pipeline_mode<synchronous>, transform_indices = @transform_4, window_bounds = array<i64: 1, 224>}, {pipeline_mode = #tpu.pipeline_mode<synchronous>, transform_indices = @transform_5, window_bounds = array<i64: 2, 8, 224>}]} {
    %c0 = arith.constant 0 : index
    %c0_0 = arith.constant 0 : index
    %c0_1 = arith.constant 0 : index
    %0 = vector.load %arg1[%c0, %c0_0, %c0_1] : memref<2x4x258xbf16, #tpu.memory_space<vmem>>, vector<2x4x258xbf16>
    %c0_2 = arith.constant 0 : index
    %c0_3 = arith.constant 0 : index
    %1 = vector.load %arg2[%c0_2, %c0_3] : memref<8x36xbf16, #tpu.memory_space<vmem>>, vector<8x36xbf16>
    %c0_4 = arith.constant 0 : index
    %c0_5 = arith.constant 0 : index
    %2 = vector.load %arg5[%c0_4, %c0_5] : memref<1x224xf32, #tpu.memory_space<vmem>>, vector<1x224xf32>
    %cst = arith.constant 0.000000e+00 : f32
    %3 = vector.broadcast %cst : f32 to vector<8x1xf32>
    %cst_6 = arith.constant 0.000000e+00 : f32
    %4 = vector.broadcast %cst_6 : f32 to vector<8x1xf32>
    %5 = vector.extract_strided_slice %0 {offsets = [0, 0, 0], sizes = [1, 4, 258], strides = [1, 1, 1]} : vector<2x4x258xbf16> to vector<1x4x258xbf16>
    %6 = vector.shape_cast %5 : vector<1x4x258xbf16> to vector<4x258xbf16>
    %7 = vector.extract_strided_slice %6 {offsets = [0, 0], sizes = [4, 224], strides = [1, 1]} : vector<4x258xbf16> to vector<4x224xbf16>
    %8 = vector.extract_strided_slice %6 {offsets = [0, 1], sizes = [4, 224], strides = [1, 1]} : vector<4x258xbf16> to vector<4x224xbf16>
    %9 = vector.extract_strided_slice %6 {offsets = [0, 2], sizes = [4, 224], strides = [1, 1]} : vector<4x258xbf16> to vector<4x224xbf16>
    %10 = vector.extract_strided_slice %6 {offsets = [0, 16], sizes = [4, 224], strides = [1, 1]} : vector<4x258xbf16> to vector<4x224xbf16>
    %11 = vector.extract_strided_slice %6 {offsets = [0, 17], sizes = [4, 224], strides = [1, 1]} : vector<4x258xbf16> to vector<4x224xbf16>
    %12 = vector.extract_strided_slice %6 {offsets = [0, 18], sizes = [4, 224], strides = [1, 1]} : vector<4x258xbf16> to vector<4x224xbf16>
    %13 = vector.extract_strided_slice %6 {offsets = [0, 32], sizes = [4, 224], strides = [1, 1]} : vector<4x258xbf16> to vector<4x224xbf16>
    %14 = vector.extract_strided_slice %6 {offsets = [0, 33], sizes = [4, 224], strides = [1, 1]} : vector<4x258xbf16> to vector<4x224xbf16>
    %15 = vector.extract_strided_slice %6 {offsets = [0, 34], sizes = [4, 224], strides = [1, 1]} : vector<4x258xbf16> to vector<4x224xbf16>
    %16 = tpu.concatenate %7, %8, %9, %10, %11, %12, %13, %14, %15 in 0 : vector<4x224xbf16>, vector<4x224xbf16>, vector<4x224xbf16>, vector<4x224xbf16>, vector<4x224xbf16>, vector<4x224xbf16>, vector<4x224xbf16>, vector<4x224xbf16>, vector<4x224xbf16> -> vector<36x224xbf16>
    %cst_7 = arith.constant dense<0.000000e+00> : vector<8x224xf32>
    %17 = tpu.matmul %1, %16, %cst_7 {dimension_numbers = #tpu.dot_dimension_numbers<[1], [0], [0], [1], [0, 0, 1, 1], [], []>} : vector<8x36xbf16>, vector<36x224xbf16>, vector<8x224xf32> -> vector<8x224xf32>
    %18 = vector.broadcast %2 : vector<1x224xf32> to vector<8x224xf32>
    %19 = arith.mulf %17, %18 : vector<8x224xf32>
    %cst_8 = arith.constant dense<0.000000e+00> : vector<8xf32>
    %20 = vector.multi_reduction <add>, %19, %cst_8 [1] : vector<8x224xf32> to vector<8xf32>
    %21 = vector.shape_cast %20 : vector<8xf32> to vector<8x1xf32>
    %22 = arith.addf %3, %21 : vector<8x1xf32>
    %23 = arith.mulf %19, %17 : vector<8x224xf32>
    %cst_9 = arith.constant dense<0.000000e+00> : vector<8xf32>
    %24 = vector.multi_reduction <add>, %23, %cst_9 [1] : vector<8x224xf32> to vector<8xf32>
    %25 = vector.shape_cast %24 : vector<8xf32> to vector<8x1xf32>
    %26 = arith.addf %4, %25 : vector<8x1xf32>
    %27 = vector.extract_strided_slice %0 {offsets = [1, 0, 0], sizes = [1, 4, 258], strides = [1, 1, 1]} : vector<2x4x258xbf16> to vector<1x4x258xbf16>
    %28 = vector.shape_cast %27 : vector<1x4x258xbf16> to vector<4x258xbf16>
    %29 = vector.extract_strided_slice %28 {offsets = [0, 0], sizes = [4, 224], strides = [1, 1]} : vector<4x258xbf16> to vector<4x224xbf16>
    %30 = vector.extract_strided_slice %28 {offsets = [0, 1], sizes = [4, 224], strides = [1, 1]} : vector<4x258xbf16> to vector<4x224xbf16>
    %31 = vector.extract_strided_slice %28 {offsets = [0, 2], sizes = [4, 224], strides = [1, 1]} : vector<4x258xbf16> to vector<4x224xbf16>
    %32 = vector.extract_strided_slice %28 {offsets = [0, 16], sizes = [4, 224], strides = [1, 1]} : vector<4x258xbf16> to vector<4x224xbf16>
    %33 = vector.extract_strided_slice %28 {offsets = [0, 17], sizes = [4, 224], strides = [1, 1]} : vector<4x258xbf16> to vector<4x224xbf16>
    %34 = vector.extract_strided_slice %28 {offsets = [0, 18], sizes = [4, 224], strides = [1, 1]} : vector<4x258xbf16> to vector<4x224xbf16>
    %35 = vector.extract_strided_slice %28 {offsets = [0, 32], sizes = [4, 224], strides = [1, 1]} : vector<4x258xbf16> to vector<4x224xbf16>
    %36 = vector.extract_strided_slice %28 {offsets = [0, 33], sizes = [4, 224], strides = [1, 1]} : vector<4x258xbf16> to vector<4x224xbf16>
    %37 = vector.extract_strided_slice %28 {offsets = [0, 34], sizes = [4, 224], strides = [1, 1]} : vector<4x258xbf16> to vector<4x224xbf16>
    %38 = tpu.concatenate %29, %30, %31, %32, %33, %34, %35, %36, %37 in 0 : vector<4x224xbf16>, vector<4x224xbf16>, vector<4x224xbf16>, vector<4x224xbf16>, vector<4x224xbf16>, vector<4x224xbf16>, vector<4x224xbf16>, vector<4x224xbf16>, vector<4x224xbf16> -> vector<36x224xbf16>
    %cst_10 = arith.constant dense<0.000000e+00> : vector<8x224xf32>
    %39 = tpu.matmul %1, %38, %cst_10 {dimension_numbers = #tpu.dot_dimension_numbers<[1], [0], [0], [1], [0, 0, 1, 1], [], []>} : vector<8x36xbf16>, vector<36x224xbf16>, vector<8x224xf32> -> vector<8x224xf32>
    %40 = vector.broadcast %2 : vector<1x224xf32> to vector<8x224xf32>
    %41 = arith.mulf %39, %40 : vector<8x224xf32>
    %cst_11 = arith.constant dense<0.000000e+00> : vector<8xf32>
    %42 = vector.multi_reduction <add>, %41, %cst_11 [1] : vector<8x224xf32> to vector<8xf32>
    %43 = vector.shape_cast %42 : vector<8xf32> to vector<8x1xf32>
    %44 = arith.addf %22, %43 : vector<8x1xf32>
    %45 = arith.mulf %41, %39 : vector<8x224xf32>
    %cst_12 = arith.constant dense<0.000000e+00> : vector<8xf32>
    %46 = vector.multi_reduction <add>, %45, %cst_12 [1] : vector<8x224xf32> to vector<8xf32>
    %47 = vector.shape_cast %46 : vector<8xf32> to vector<8x1xf32>
    %48 = arith.addf %26, %47 : vector<8x1xf32>
    %cst_13 = arith.constant 0.00255102036 : f32
    %49 = vector.broadcast %cst_13 : f32 to vector<8x1xf32>
    %50 = arith.mulf %44, %49 : vector<8x1xf32>
    %cst_14 = arith.constant 0.00255102036 : f32
    %51 = vector.broadcast %cst_14 : f32 to vector<8x1xf32>
    %52 = arith.mulf %48, %51 : vector<8x1xf32>
    %53 = arith.mulf %50, %50 : vector<8x1xf32>
    %54 = arith.subf %52, %53 : vector<8x1xf32>
    %cst_15 = arith.constant 0.000000e+00 : f32
    %55 = vector.broadcast %cst_15 : f32 to vector<8x1xf32>
    %56 = arith.maximumf %54, %55 : vector<8x1xf32>
    %c0_16 = arith.constant 0 : index
    %c0_17 = arith.constant 0 : index
    %57 = vector.load %arg3[%c0_16, %c0_17] : memref<8x1xf32, #tpu.memory_space<vmem>>, vector<8x1xf32>
    %cst_18 = arith.constant 9.99999974E-6 : f32
    %58 = vector.broadcast %cst_18 : f32 to vector<8x1xf32>
    %59 = arith.addf %56, %58 : vector<8x1xf32>
    %60 = math.rsqrt %59 : vector<8x1xf32>
    %61 = arith.mulf %57, %60 : vector<8x1xf32>
    %c0_19 = arith.constant 0 : index
    %c0_20 = arith.constant 0 : index
    %62 = vector.load %arg4[%c0_19, %c0_20] : memref<8x1xf32, #tpu.memory_space<vmem>>, vector<8x1xf32>
    %63 = arith.mulf %50, %61 : vector<8x1xf32>
    %64 = arith.subf %62, %63 : vector<8x1xf32>
    %65 = vector.broadcast %61 : vector<8x1xf32> to vector<8x224xf32>
    %66 = arith.mulf %17, %65 : vector<8x224xf32>
    %67 = vector.broadcast %64 : vector<8x1xf32> to vector<8x224xf32>
    %68 = arith.addf %66, %67 : vector<8x224xf32>
    %cst_21 = arith.constant 0.00999999977 : f32
    %69 = vector.broadcast %cst_21 : f32 to vector<8x224xf32>
    %70 = arith.mulf %69, %68 : vector<8x224xf32>
    %71 = arith.maximumf %68, %70 : vector<8x224xf32>
    %c0_22 = arith.constant 0 : index
    %c0_23 = arith.constant 0 : index
    %c0_24 = arith.constant 0 : index
    %72 = vector.load %arg6[%c0_22, %c0_23, %c0_24] : memref<2x8x224xf32, #tpu.memory_space<vmem>>, vector<1x8x224xf32>
    %73 = vector.shape_cast %72 : vector<1x8x224xf32> to vector<8x224xf32>
    %74 = vector.shape_cast %71 : vector<8x224xf32> to vector<1x8x224xf32>
    tpu.vector_store %arg6[%c0_22, %c0_23, %c0_24], %74 {strides = array<i32>} : memref<2x8x224xf32, #tpu.memory_space<vmem>>, vector<1x8x224xf32>,
    %75 = vector.broadcast %61 : vector<8x1xf32> to vector<8x224xf32>
    %76 = arith.mulf %39, %75 : vector<8x224xf32>
    %77 = vector.broadcast %64 : vector<8x1xf32> to vector<8x224xf32>
    %78 = arith.addf %76, %77 : vector<8x224xf32>
    %cst_25 = arith.constant 0.00999999977 : f32
    %79 = vector.broadcast %cst_25 : f32 to vector<8x224xf32>
    %80 = arith.mulf %79, %78 : vector<8x224xf32>
    %81 = arith.maximumf %78, %80 : vector<8x224xf32>
    %c1 = arith.constant 1 : index
    %c0_26 = arith.constant 0 : index
    %c0_27 = arith.constant 0 : index
    %82 = vector.load %arg6[%c1, %c0_26, %c0_27] : memref<2x8x224xf32, #tpu.memory_space<vmem>>, vector<1x8x224xf32>
    %83 = vector.shape_cast %82 : vector<1x8x224xf32> to vector<8x224xf32>
    %84 = vector.shape_cast %81 : vector<8x224xf32> to vector<1x8x224xf32>
    tpu.vector_store %arg6[%c1, %c0_26, %c0_27], %84 {strides = array<i32>} : memref<2x8x224xf32, #tpu.memory_space<vmem>>, vector<1x8x224xf32>,
    return
  }
  func.func @transform_0(%arg0: i32) -> (i32, i32, i32) {
    %c0_i32 = arith.constant 0 : i32
    %c0_i32_0 = arith.constant 0 : i32
    %c0_i32_1 = arith.constant 0 : i32
    %c0_i32_2 = arith.constant 0 : i32
    return %c0_i32, %c0_i32_0, %c0_i32_1 : i32, i32, i32
  }
  func.func @transform_1(%arg0: i32) -> (i32, i32) {
    %c0_i32 = arith.constant 0 : i32
    %c0_i32_0 = arith.constant 0 : i32
    %c0_i32_1 = arith.constant 0 : i32
    return %c0_i32, %c0_i32_0 : i32, i32
  }
  func.func @transform_2(%arg0: i32) -> (i32, i32) {
    %c0_i32 = arith.constant 0 : i32
    %c0_i32_0 = arith.constant 0 : i32
    %c0_i32_1 = arith.constant 0 : i32
    return %c0_i32, %c0_i32_0 : i32, i32
  }
  func.func @transform_3(%arg0: i32) -> (i32, i32) {
    %c0_i32 = arith.constant 0 : i32
    %c0_i32_0 = arith.constant 0 : i32
    %c0_i32_1 = arith.constant 0 : i32
    return %c0_i32, %c0_i32_0 : i32, i32
  }
  func.func @transform_4(%arg0: i32) -> (i32, i32) {
    %c0_i32 = arith.constant 0 : i32
    %c0_i32_0 = arith.constant 0 : i32
    %c0_i32_1 = arith.constant 0 : i32
    return %c0_i32, %c0_i32_0 : i32, i32
  }
  func.func @transform_5(%arg0: i32) -> (i32, i32, i32) {
    %c0_i32 = arith.constant 0 : i32
    %c0_i32_0 = arith.constant 0 : i32
    %c0_i32_1 = arith.constant 0 : i32
    %c0_i32_2 = arith.constant 0 : i32
    return %c0_i32, %c0_i32_0, %c0_i32_1 : i32, i32, i32
  }
}

</mosaic_0001>

<bundles_post_ra>
// kernel: conv_block_forward.1
= control target key start
LH: loop header
LB: loop body
LE: loop exit
PB: predicated region body
PF: predicated region fallthrough
CT: control target
= control target key end

     0   :  { %v29_v0 = vlaneseq  ;;  %v457_v2 = vmov 1983009808   ;;  %s458_s22 = smov 94   ;;  %s460_s23 = smov 110   ;;  %v464_v26 = vmov 0   ;;  %vm104_vm0 = vcmask 769024   ;;  %s608_s0 = inlined_call_operand.vmem [shape: bf16[2,4,258], index: 0, kind: input, shape index: {}]   ;;  %s609_s1 = inlined_call_operand.vmem [shape: bf16[8,36], index: 1, kind: input, shape index: {}]   ;;  %s610_s4 = inlined_call_operand.vmem [shape: f32[1,224], index: 4, kind: input, shape index: {}]   ;;  %s611_s2 = inlined_call_operand.vmem [shape: f32[8,1], index: 2, kind: input, shape index: {}]   ;;  %s612_s3 = inlined_call_operand.vmem [shape: f32[8,1], index: 3, kind: input, shape index: {}]   ;;  %s613_s5 = inlined_call_operand.vmem [shape: f32[2,8,224], index: 5, kind: output, shape index: {}]  }
   0x1   :  { %v21_v1 = vld [vmem:[%s608_s0] sm:$0x3f]  ;;  %v27_v3 = vunpack.c.l.s4 %v457_v2  ;;  %v22_v8 = vld [vmem:[%s608_s0 + $0x6] sm:$0x3f]  ;;  %s459_s0 = smov 111   ;;  %s461_s24 = smov 96   ;;  %184 = vmatprep.mubr.bf16.mxu0 %v464_v26  ;;  %363 = vmatprep.mubr.bf16.mxu1 %v464_v26 }
   0x2   :  { %v500_v4 = vshrl.u32 %v29_v0, 7  ;;  %v90_v6 = vcombine.high %v21_v1, %v21_v1  ;;  %v277_v13 = vcombine.high %v22_v8, %v22_v8  ;;  %v34_v14 = vcombine.low %v21_v1, %v21_v1  ;;  %s462_s25 = smov 95   ;;  %s463_s26 = smov 127   ;;  %449 = vset.pattern.permute.xlu1 %v464_v26  ;;  %450 = vset.pattern.permute.xlu0 %v464_v26 }
   0x3   :  { %v28_v5 = vunpack.c.0.s8 %v27_v3  ;;  %v228_v18 = vcombine.low %v22_v8, %v22_v8  ;;  %s465_s27 = smov 126   ;;  %s466_s28 = smov 112   ;;  %vm107_vm1 = vcmask 1041408   ;;  %vm114_vm2 = vcmask 1043456  }
   0x4   :  { %vm87_vm3 = vcmask 777216   ;;  %vm119_vm4 = vcmask 1045504   ;;  %vm73_vm5 = vcmask 900096   ;;  %vm79_vm6 = vcmask 785408  }
   0x5   :  { %v31_v7 = vsub.s32 %v28_v5, %v500_v4  ;;  %vm67_vm7 = vcmask 908288   ;;  %vm47_vm8 = vcmask 1039360   ;;  %vm54_vm9 = vcmask 1031168  }
   0x6   :  { %vm61_vm10 = vcmask 916480   ;;  %vm142_vm11 = vcmask 293888  }
   0x7   :  { %v97_v9 = vrot.slane %v90_v6, %v31_v7  ;;  %v506_v10 = vrot.slane %v21_v1, %v31_v7  ;;  %v508_v11 = vrot.slane %v22_v8, %v31_v7  ;;  %v284_v15 = vrot.slane %v277_v13, %v31_v7 }
   0x8   :  { %v41_v17 = vrot.slane %v34_v14, %v31_v7  ;;  %v235_v20 = vrot.slane %v228_v18, %v31_v7 }
   0x9   :  { %102 = vrot.lane.b32.xlu1 %v97_v9, %s458_s22  ;;  %98 = vrot.lane.b32.xlu0 %v506_v10, %s458_s22  ;;  %v513_v12 = vcombine.high %v506_v10, %v506_v10  ;;  %v519_v16 = vcombine.high %v508_v11, %v508_v11  ;;  %v49_v22 = vcombine.low %v506_v10, %v506_v10 }
   0xa   :  { %v42_v19 = vcombine.high %v41_v17, %v41_v17  ;;  %v236_v21 = vcombine.high %v235_v20, %v235_v20  ;;  %v242_v23 = vcombine.low %v508_v11, %v508_v11  ;;  %v248_v24 = vcombine.low %v235_v20, %v235_v20 }
   0xb   :  { %v56_v25 = vcombine.low %v41_v17, %v41_v17 }
   0xd   :  { %285 = vrot.lane.b32.xlu1 %v508_v11, %s458_s22  ;;  %100 = vrot.lane.b32.xlu0 %v513_v12, %s458_s22 }
  0x11   :  { %289 = vrot.lane.b32.xlu1 %v284_v15, %s458_s22  ;;  %287 = vrot.lane.b32.xlu0 %v519_v16, %s458_s22 }
  0x15   :  { %65 = vrot.lane.b32.xlu1 %v513_v12, %s459_s0  ;;  %63 = vrot.lane.b32.xlu0 %v506_v10, %s459_s0 }
  0x19   :  { %71 = vrot.lane.b32.xlu1 %v42_v19, %s460_s23  ;;  %69 = vrot.lane.b32.xlu0 %v41_v17, %s460_s23 }
  0x1d   :  { %256 = vrot.lane.b32.xlu1 %v519_v16, %s459_s0  ;;  %254 = vrot.lane.b32.xlu0 %v508_v11, %s459_s0 }
  0x21   :  { %261 = vrot.lane.b32.xlu1 %v236_v21, %s460_s23  ;;  %259 = vrot.lane.b32.xlu0 %v235_v20, %s460_s23 }
  0x25   :  { %77 = vrot.lane.b32.xlu1 %v506_v10, %s461_s24  ;;  %75 = vrot.lane.b32.xlu0 %v49_v22, %s461_s24 }
  0x29   :  { %85 = vrot.lane.b32.xlu1 %v49_v22, %s462_s25  ;;  %83 = vrot.lane.b32.xlu0 %v41_v17, %s462_s25 }
  0x2d   :  { %266 = vrot.lane.b32.xlu1 %v508_v11, %s461_s24  ;;  %264 = vrot.lane.b32.xlu0 %v242_v23, %s461_s24 }
  0x31   :  { %273 = vrot.lane.b32.xlu1 %v242_v23, %s462_s25  ;;  %271 = vrot.lane.b32.xlu0 %v235_v20, %s462_s25 }
  0x35   :  { %269 = vrot.lane.b32.xlu1 %v248_v24, %s462_s25  ;;  %81 = vrot.lane.b32.xlu0 %v56_v25, %s462_s25 }
  0x39   :  { %45 = vrot.lane.b32.xlu1 %v42_v19, %s463_s26  ;;  %43 = vrot.lane.b32.xlu0 %v41_v17, %s463_s26 }
  0x3d   :  { %239 = vrot.lane.b32.xlu1 %v236_v21, %s463_s26  ;;  %237 = vrot.lane.b32.xlu0 %v235_v20, %s463_s26 }
  0x41   :  { %52 = vrot.lane.b32.xlu1 %v506_v10, %s465_s27  ;;  %50 = vrot.lane.b32.xlu0 %v49_v22, %s465_s27 }
  0x45   :  { %245 = vrot.lane.b32.xlu1 %v508_v11, %s465_s27  ;;  %243 = vrot.lane.b32.xlu0 %v242_v23, %s465_s27 }
  0x49   :  { %59 = vrot.lane.b32.xlu1 %v41_v17, %s466_s28  ;;  %57 = vrot.lane.b32.xlu0 %v56_v25, %s466_s28 }
  0x4d   :  { %251 = vrot.lane.b32.xlu1 %v235_v20, %s466_s28  ;;  %249 = vrot.lane.b32.xlu0 %v248_v24, %s466_s28 }
  0x7b   :  { %v103_v27 = vpop.permute.xlu1 %102  ;;  %v99_v28 = vpop.permute.xlu0 %98 }
  0x7f   :  { %v286_v29 = vpop.permute.xlu1 %285  ;;  %v101_v30 = vpop.permute.xlu0 %100 }
  0x80   :  { %v106_v31 = vsel %vm104_vm0, %v101_v30, %v103_v27  ;;  %v105_v32 = vsel %vm104_vm0, %v99_v28, %v101_v30 }
  0x81   :  { %433 = vmatprep.subr.msk.bf16.mxu0 %vm107_vm1, %v106_v31  ;;  %v147_v33 = vsel %vm107_vm1, %v105_v32, 0 }
  0x82   :  { %163 = vmatpush1.bf16.msra.mxu0 %v147_v33 }
  0x83   :  { %v290_v34 = vpop.permute.xlu1 %289  ;;  %v288_v35 = vpop.permute.xlu0 %287 }
  0x84   :  { %v292_v36 = vsel %vm104_vm0, %v288_v35, %v290_v34  ;;  %v291_v37 = vsel %vm104_vm0, %v286_v29, %v288_v35 }
  0x85   :  { %435 = vmatprep.subr.msk.bf16.mxu1 %vm107_vm1, %v292_v36  ;;  %v326_v38 = vsel %vm107_vm1, %v291_v37, 0 }
  0x86   :  { %342 = vmatpush1.bf16.msra.mxu1 %v326_v38 }
  0x87   :  { %v66_v39 = vpop.permute.xlu1 %65  ;;  %v64_v40 = vpop.permute.xlu0 %63 }
  0x88   :  { %v68_v3 = vsel %vm67_vm7, %v64_v40, %v66_v39 }
  0x8b   :  { %v72_v41 = vpop.permute.xlu1 %71  ;;  %v70_v42 = vpop.permute.xlu0 %69 }
  0x8c   :  { %v131_v49 = vsel %vm107_vm1, %v66_v39, %v72_v41  ;;  %v74_v60 = vsel %vm73_vm5, %v70_v42, %v72_v41 }
  0x8d   :  { %v128_v6 = vsel %vm107_vm1, %v68_v3, %v74_v60 }
  0x8f   :  { %v257_v43 = vpop.permute.xlu1 %256  ;;  %v255_v44 = vpop.permute.xlu0 %254 }
  0x90   :  { %v258_v5 = vsel %vm67_vm7, %v255_v44, %v257_v43 }
  0x93   :  { %v262_v45 = vpop.permute.xlu1 %261  ;;  %v260_v46 = vpop.permute.xlu0 %259 }
  0x94   :  { %v314_v57 = vsel %vm107_vm1, %v257_v43, %v262_v45  ;;  %v263_v61 = vsel %vm73_vm5, %v260_v46, %v262_v45 }
  0x95   :  { %v311_v7 = vsel %vm107_vm1, %v258_v5, %v263_v61 }
  0x97   :  { %v78_v47 = vpop.permute.xlu1 %77  ;;  %v76_v48 = vpop.permute.xlu0 %75 }
  0x98   :  { %v135_v52 = vsel %vm114_vm2, %v131_v49, %v78_v47  ;;  %v80_v0 = vsel %vm79_vm6, %v76_v48, %v78_v47  ;;  %v200_v48 = vsub.s32 1, %v500_v4  ;;  %v24_v49 = vld [vmem:[%s610_s4] sm:$0x3] }
  0x99   :  { %v133_v15 = vsel %vm114_vm2, %v128_v6, %v80_v0 }
  0x9b   :  { %v86_v50 = vpop.permute.xlu1 %85  ;;  %v84_v51 = vpop.permute.xlu0 %83 }
  0x9c   :  { %v89_v53 = vsel %vm87_vm3, %v84_v51, %v86_v50  ;;  %v201_v50 = vrot.slane %v24_v49, %v200_v48 }
  0x9d   :  { %v140_v54 = vsel %vm119_vm4, %v135_v52, %v89_v53 }
  0x9e   :  { %164 = vmatprep.subr.bf16.mxu0 %v140_v54 }
  0x9f   :  { %v267_v55 = vpop.permute.xlu1 %266  ;;  %v265_v56 = vpop.permute.xlu0 %264 }
  0xa0   :  { %v318_v62 = vsel %vm114_vm2, %v314_v57, %v267_v55  ;;  %v268_v1 = vsel %vm79_vm6, %v265_v56, %v267_v55 }
  0xa1   :  { %v316_v17 = vsel %vm114_vm2, %v311_v7, %v268_v1 }
  0xa3   :  { %v274_v58 = vpop.permute.xlu1 %273  ;;  %v272_v59 = vpop.permute.xlu0 %271 }
  0xa4   :  { %v276_v63 = vsel %vm87_vm3, %v272_v59, %v274_v58 }
  0xa5   :  { %v323_v2 = vsel %vm119_vm4, %v318_v62, %v276_v63 }
  0xa6   :  { %343 = vmatprep.subr.bf16.mxu1 %v323_v2 }
  0xa7   :  { %v270_v8 = vpop.permute.xlu1 %269  ;;  %v82_v9 = vpop.permute.xlu0 %81 }
  0xa8   :  { %v275_v13 = vsel %vm87_vm3, %v270_v8, %v272_v59  ;;  %v88_v14 = vsel %vm87_vm3, %v82_v9, %v84_v51 }
  0xa9   :  { %v137_v18 = vsel %vm119_vm4, %v133_v15, %v88_v14  ;;  %v320_v19 = vsel %vm119_vm4, %v316_v17, %v275_v13 }
  0xaa   :  { %165 = vmatpush1.bf16.msra.mxu0 %v137_v18  ;;  %344 = vmatpush1.bf16.msra.mxu1 %v320_v19 }
  0xab   :  { %v46_v20 = vpop.permute.xlu1 %45  ;;  %v44_v21 = vpop.permute.xlu0 %43 }
  0xac   :  { %v48_v28 = vsel %vm47_vm8, %v44_v21, %v46_v20  ;;  %v113_v30 = vsel %vm107_vm1, %v513_v12, %v46_v20 }
  0xad   :  { %v110_v31 = vsel %vm107_vm1, %v506_v10, %v48_v28  ;;  %v23_v10 = vld [vmem:[%s609_s1] sm:$0xf] }
  0xae   :  { %v391_v28 = vld [vmem:[%s611_s2] sm:$0xff] }
  0xaf   :  { %v240_v22 = vpop.permute.xlu1 %239  ;;  %v238_v23 = vpop.permute.xlu0 %237 }
  0xb0   :  { %v241_v35 = vsel %vm47_vm8, %v238_v23, %v240_v22  ;;  %v298_v12 = vsel %vm107_vm1, %v519_v16, %v240_v22 }
  0xb1   :  { %v295_v41 = vsel %vm107_vm1, %v508_v11, %v241_v35  ;;  %v196_v11 = vsub.s32 0, %v500_v4 }
  0xb3   :  { %v53_v24 = vpop.permute.xlu1 %52  ;;  %v51_v25 = vpop.permute.xlu0 %50  ;;  %v197_v52 = vrot.slane %v24_v49, %v196_v11 }
  0xb4   :  { %v55_v29 = vsel %vm54_vm9, %v51_v25, %v53_v24  ;;  %v118_v32 = vsel %vm114_vm2, %v113_v30, %v53_v24 }
  0xb5   :  { %v116_v38 = vsel %vm114_vm2, %v110_v31, %v55_v29  ;;  %v395_v31 = vld [vmem:[%s612_s3] sm:$0xff] }
  0xb7   :  { %v246_v26 = vpop.permute.xlu1 %245  ;;  %v244_v27 = vpop.permute.xlu0 %243 }
  0xb8   :  { %v247_v39 = vsel %vm54_vm9, %v244_v27, %v246_v26  ;;  %v302_v42 = vsel %vm114_vm2, %v298_v12, %v246_v26 }
  0xb9   :  { %v300_v47 = vsel %vm114_vm2, %v295_v41, %v247_v39 }
  0xbb   :  { %v60_v33 = vpop.permute.xlu1 %59  ;;  %v58_v34 = vpop.permute.xlu0 %57 }
  0xbc   :  { %v62_v36 = vsel %vm61_vm10, %v58_v34, %v60_v33  ;;  %v124_v37 = vsel %vm119_vm4, %v118_v32, %v60_v33 }
  0xbd   :  { %166 = vmatprep.subr.bf16.mxu0 %v124_v37  ;;  %v121_v40 = vsel %vm119_vm4, %v116_v38, %v62_v36 }
  0xbe   :  { %167 = vmatpush1.bf16.msra.mxu0 %v121_v40 }
  0xbf   :  { %v252_v43 = vpop.permute.xlu1 %251  ;;  %v250_v44 = vpop.permute.xlu0 %249 }
  0xc0   :  { %v253_v45 = vsel %vm61_vm10, %v250_v44, %v252_v43  ;;  %v307_v46 = vsel %vm119_vm4, %v302_v42, %v252_v43 }
  0xc1   :  { %434 = vmatmul.mubr.msk.bf16.vlgmr.msra.gmra.mxu0 %vm142_vm11, %v23_v10  ;;  %345 = vmatprep.subr.bf16.mxu1 %v307_v46  ;;  %v304_v16 = vsel %vm119_vm4, %v300_v47, %v253_v45 }
  0xc2   :  { %346 = vmatpush1.bf16.msra.mxu1 %v304_v16 }
  0xc5   :  { %436 = vmatmul.mubr.msk.bf16.vlgmr.msra.gmra.mxu1 %vm142_vm11, %v23_v10 }
 0x181   :  { %v186_v51 = vpop.f32.mrf.mxu0 }
 0x182   :  { %v204_v57 = vmul.f32 %v197_v52, %v186_v51 }
 0x183   :  { %v188_v53 = vpop.f32.mrf.mxu0 }
 0x184   :  { %v205_v54 = vmul.f32 %v201_v50, %v188_v53  ;;  %v212_v1 = vmul.f32 %v204_v57, %v186_v51 }
 0x185   :  { %v190_v55 = vpop.f32.mrf.mxu0  ;;  %v365_v56 = vpop.f32.mrf.mxu1 }
 0x186   :  { %v213_v58 = vmul.f32 %v205_v54, %v188_v53  ;;  %v207_v59 = vsel %vm79_vm6, %v205_v54, 0.0  ;;  %v372_v2 = vmul.f32 %v365_v56, %v197_v52 }
 0x187   :  { %v191_v60 = vpop.f32.mrf.mxu0  ;;  %v367_v61 = vpop.f32.mrf.mxu1  ;;  %v208_v62 = vadd.f32 %v207_v59, %v204_v57 }
 0x188   :  { %v373_v63 = vmul.f32 %v367_v61, %v201_v50  ;;  %v214_v4 = vsel %vm79_vm6, %v213_v58, 0.0  ;;  %v379_v13 = vmul.f32 %v372_v2, %v365_v56 }
 0x189   :  { %209 = vadd.xlane.f32.xlu0 %v208_v62  ;;  %v369_v0 = vpop.f32.mrf.mxu1  ;;  %v215_v7 = vadd.f32 %v214_v4, %v212_v1 }
 0x18a   :  { %v380_v3 = vmul.f32 %v373_v63, %v367_v61  ;;  %v374_v5 = vsel %vm79_vm6, %v373_v63, 0.0 }
 0x18b   :  { %v370_v6 = vpop.f32.mrf.mxu1  ;;  %v375_v8 = vadd.f32 %v374_v5, %v372_v2 }
 0x18c   :  { %v381_v9 = vsel %vm79_vm6, %v380_v3, 0.0 }
 0x18d   :  { %216 = vadd.xlane.f32.xlu0 %v215_v7  ;;  %376 = vadd.xlane.f32.xlu1 %v375_v8  ;;  %v382_v14 = vadd.f32 %v381_v9, %v379_v13 }
 0x191   :  { %383 = vadd.xlane.f32.xlu0 %v382_v14 }
 0x212   :  { %v210_v15 = vpop.xlane.xlu0 %209 }
 0x216   :  { %v377_v17 = vpop.xlane.xlu1 %376  ;;  %v217_v18 = vpop.xlane.xlu0 %216 }
 0x217   :  { %v378_v19 = vadd.f32 %v377_v17, %v210_v15 }
 0x219   :  { %v386_v20 = vmul.f32 0.0025510204, %v378_v19 }
 0x21a   :  { %v384_v21 = vpop.xlane.xlu0 %383 }
 0x21b   :  { %v385_v22 = vadd.f32 %v384_v21, %v217_v18  ;;  %v388_v23 = vmul.f32 %v386_v20, %v386_v20 }
 0x21d   :  { %v387_v24 = vmul.f32 0.0025510204, %v385_v22 }
 0x21f   :  { %v389_v25 = vsub.f32 %v387_v24, %v388_v23 }
 0x221   :  { %v390_v26 = vmax.f32 %v389_v25, 0.0 }
 0x223   :  { %v392_v27 = vadd.f32 1e-05, %v390_v26 }
 0x225   :  { %455 = vrsqrt.f32 %v392_v27 }
 0x232   :  { %v456_v29 = vpop.eup %455 }
 0x233   :  { %v394_v30 = vmul.f32 %v456_v29, %v391_v28 }
 0x235   :  { %400 = vperm.xlu1 %449, %v394_v30   ;;  %v396_v32 = vmul.f32 %v394_v30, %v386_v20 }
 0x237   :  { %v397_v33 = vsub.f32 %v395_v31, %v396_v32 }
 0x239   :  { %407 = vperm.xlu0 %450, %v397_v33  }
 0x2b0   :  { %v401_v34 = vpop.permute.xlu1 %400 }
 0x2b1   :  { %v403_v35 = vmul.f32 %v401_v34, %v186_v51  ;;  %v404_v36 = vmul.f32 %v401_v34, %v188_v53  ;;  %v418_v37 = vmul.f32 %v401_v34, %v365_v56  ;;  %v419_v38 = vmul.f32 %v401_v34, %v367_v61 }
 0x2b4   :  { %v408_v39 = vpop.permute.xlu0 %407 }
 0x2b5   :  { %v410_v40 = vadd.f32 %v408_v39, %v403_v35  ;;  %v411_v12 = vadd.f32 %v408_v39, %v404_v36  ;;  %v420_v10 = vadd.f32 %v418_v37, %v408_v39  ;;  %v421_v41 = vadd.f32 %v419_v38, %v408_v39 }
 0x2b7   :  { %v412_v42 = vmul.f32 0.01, %v410_v40  ;;  %v413_v43 = vmul.f32 0.01, %v411_v12  ;;  %v422_v44 = vmul.f32 0.01, %v420_v10 }
 0x2b8   :  { %v423_v45 = vmul.f32 0.01, %v421_v41 }
 0x2b9   :  { %v414_v46 = vmax.f32 %v410_v40, %v412_v42  ;;  %v415_v47 = vmax.f32 %v411_v12, %v413_v43  ;;  %v424_v16 = vmax.f32 %v420_v10, %v422_v44 }
 0x2ba   :  { %v425_v48 = vmax.f32 %v421_v41, %v423_v45 }
 0x2bb   :  { %416 = vst [vmem:[%s613_s5] sm:$0xff] %v414_v46  ;;  %417 = vst.msk [vmem:[%s613_s5 + $0x8] sm:$0xff] %vm79_vm6, %v415_v47 }
 0x2bc   :  { %437 = vst [vmem:[%s613_s5 + $0x10] sm:$0xff] %v424_v16  ;;  %438 = vst.msk [vmem:[%s613_s5 + $0x18] sm:$0xff] %vm79_vm6, %v425_v48 }

</bundles_post_ra>
